<compile_context>
chip_gen: v7x
topology: tpu7x:2x2x1
jax: 0.10.0
libtpu: 0.0.40
codegen_flags: <defaults>
</compile_context>

<pallas_src>
import functools

import jax
import jax.numpy as jnp
from jax import lax
from jax.experimental import pallas as pl
from jax.experimental.pallas import tpu as pltpu


def attention_kernel(xq_ref, xkv_ref, wq_ref, wk_ref, wv_ref, cb_ref, wo_ref,
                     wob_ref, gamma_ref, beta_ref, o_ref,
                     q_scr, m_scr, l_scr, o_scr, acc_ref,
                     *, heads_per_group, head_dim, eps, compute_dtype):
    G, H = heads_per_group, head_dim
    g = pl.program_id(2)
    kv = pl.program_id(3)
    last_g = pl.num_programs(2) - 1
    last_kv = pl.num_programs(3) - 1

    # ---- per-(q-tile, head-group) init: project Q for this group (content bias
    #      folded in once), reset flash m/l/acc state.
    @pl.when(kv == 0)
    def _init():
        xq = xq_ref[0].astype(compute_dtype)                      # (TQ, D)
        q = jnp.dot(xq, wq_ref[0], preferred_element_type=jnp.float32)
        q = q + cb_ref[0]                                         # (q + cb) K^T == qK^T + cbK^T
        q_scr[...] = q.astype(compute_dtype)
        m_scr[...] = jnp.full_like(m_scr, -jnp.inf)
        l_scr[...] = jnp.zeros_like(l_scr)
        o_scr[...] = jnp.zeros_like(o_scr)

    # ---- one KV tile: project K/V for this head group, online-softmax update.
    xkv = xkv_ref[0].astype(compute_dtype)                        # (TKV, D)
    k = jnp.dot(xkv, wk_ref[0], preferred_element_type=jnp.float32).astype(compute_dtype)
    v = jnp.dot(xkv, wv_ref[0], preferred_element_type=jnp.float32).astype(compute_dtype)
    q = q_scr[...]                                                # (TQ, G*H)

    # G (heads per group) is small; static unroll keeps per-head temporaries tiny.
    for i in range(G):
        sl = slice(i * H, (i + 1) * H)
        # Scores: contract head_dim without materializing k.T (NT-form dot_general).
        # NOTE: no 1/sqrt(H) scaling — matches the torch module exactly.
        s = lax.dot_general(q[:, sl], k[:, sl], (((1,), (1,)), ((), ())),
                            preferred_element_type=jnp.float32)   # (TQ, TKV) f32
        m_prev = m_scr[i]                                         # (TQ, 1)
        m_new = jnp.maximum(m_prev, jnp.max(s, axis=-1, keepdims=True))
        alpha = jnp.exp(m_prev - m_new)                           # f32
        p = jnp.exp(s - m_new)                                    # f32 softmax numerator
        l_scr[i] = alpha * l_scr[i] + jnp.sum(p, axis=-1, keepdims=True)
        pv = jnp.dot(p.astype(compute_dtype), v[:, sl],
                     preferred_element_type=jnp.float32)          # (TQ, H) f32
        o_scr[:, sl] = alpha * o_scr[:, sl] + pv
        m_scr[i] = m_new

    # ---- after the last KV tile: normalize, fold all G heads through Wo^T in a
    #      single matmul, accumulate across head groups, epilogue on last group.
    @pl.when(kv == last_kv)
    def _finalize():
        for i in range(G):
            sl = slice(i * H, (i + 1) * H)
            inv = pl.reciprocal(l_scr[i], approx=False)           # exact; tiny (TQ,1) tensor
            o_scr[:, sl] = o_scr[:, sl] * inv
        # One (TQ, G*H) @ (G*H, D) matmul: full contraction width for the MXU.
        local = jnp.dot(o_scr[...].astype(compute_dtype), wo_ref[0],
                        preferred_element_type=jnp.float32)       # (TQ, D) f32

        @pl.when(g == 0)
        def _():
            acc_ref[...] = local                                  # assign on first group

        @pl.when(g > 0)
        def _():
            acc_ref[...] += local                                 # one RMW per remaining group

        @pl.when(g == last_g)
        def _epilogue():
            x = xq_ref[0].astype(jnp.float32)
            proj = acc_ref[...] + wob_ref[...]
            # Dropout (p=0.1) is identity at inference (eval mode).
            res = x + proj
            mean = jnp.mean(res, axis=-1, keepdims=True)
            var = jnp.mean((res - mean) ** 2, axis=-1, keepdims=True)
            y = (res - mean) * lax.rsqrt(var + eps)
            o_ref[0] = (y * gamma_ref[...] + beta_ref[...]).astype(o_ref.dtype)


def attention_forward(x, y, params, *, h, eps=1e-5, heads_per_group=None,
                      block_q=None, block_kv=None, compute_dtype=jnp.bfloat16):
    """X, Y ~ (N, L, d_model).

    NOTE: the torch module computes Q, K and V all from X; Y only participates
    through the L1 == L2 shape assert, mirrored here.
    """
    N, L, D = x.shape
    assert y.shape[1] == L, "L1 must equal L2"
    assert D % h == 0
    H = D // h

    if heads_per_group is None:
        # Aim for a >=256-wide group contraction (v6e/v7x MXU fill), capped at h.
        heads_per_group = max(1, min(h, max(1, 256 // H)))
        while h % heads_per_group:
            heads_per_group -= 1
    assert h % heads_per_group == 0
    G = heads_per_group
    GH = G * H
    n_g = h // G

    if block_q is None:
        block_q = min(L, 256)
    if block_kv is None:
        block_kv = min(L, 512)
    assert L % block_q == 0 and L % block_kv == 0
    assert block_q % 8 == 0 and block_kv % 8 == 0

    wq, wk, wv, cb, wo_w, wo_b, gamma, beta = params

    # Head-group pre-split (wrapper-side layout plumbing, done once):
    #   Wq/Wk/Wv: (D, D) -> (n_g, D, G*H)   column blocks (group g = heads g*G..)
    #   Wo^T    : (D, D) -> (n_g, G*H, D)   row blocks of Wo^T (torch Linear: O @ Wo_w.T + b)
    def group_cols(w):
        return w.reshape(D, n_g, GH).transpose(1, 0, 2).astype(compute_dtype)

    wq_g = group_cols(wq)
    wk_g = group_cols(wk)
    wv_g = group_cols(wv)
    wo_t_g = jnp.transpose(wo_w).reshape(n_g, GH, D).astype(compute_dtype)
    cb_g = cb.reshape(n_g, 1, GH).astype(jnp.float32)
    wob2 = wo_b.reshape(1, D).astype(jnp.float32)
    gamma2 = gamma.reshape(1, D).astype(jnp.float32)
    beta2 = beta.reshape(1, D).astype(jnp.float32)

    grid = (N, L // block_q, n_g, L // block_kv)

    kernel = functools.partial(attention_kernel, heads_per_group=G, head_dim=H,
                               eps=eps, compute_dtype=compute_dtype)

    # vmem_limit_bytes derived from actual tile sizes (2x headroom), clamped to
    # a fraction of the physical VMEM of whatever generation we compile for.
    c_item = jnp.dtype(compute_dtype).itemsize
    x_item = jnp.dtype(x.dtype).itemsize
    need = (2 * (block_q + block_kv) * D * x_item          # xq / xkv streams (double-buffered)
            + 2 * (3 * D * GH + GH * D) * c_item           # Wq/Wk/Wv/Wo^T group slices
            + 2 * (GH + 3 * D) * 4                         # cb, Wo bias, gamma, beta
            + 2 * block_q * D * x_item                     # output tile
            + block_q * GH * (c_item + 4)                  # q_scr + o_scr
            + 2 * G * block_q * 4                          # m / l state
            + block_q * D * 4)                             # cross-head acc
    try:
        phys_vmem = pltpu.get_tpu_info().vmem_capacity_bytes
    except Exception:
        phys_vmem = 64 * 1024 * 1024                       # conservative (v7x per-core)
    vmem_limit = int(min(phys_vmem * 3 // 4, max(2 * need, 32 * 1024 * 1024)))

    return pl.pallas_call(
        kernel,
        out_shape=jax.ShapeDtypeStruct((N, L, D), x.dtype),
        grid=grid,
        in_specs=[
            pl.BlockSpec((1, block_q, D), lambda n, qi, g, kv: (n, qi, 0)),   # X (query rows)
            pl.BlockSpec((1, block_kv, D), lambda n, qi, g, kv: (n, kv, 0)),  # X (key/value rows)
            pl.BlockSpec((1, D, GH), lambda n, qi, g, kv: (g, 0, 0)),         # Wq group slice
            pl.BlockSpec((1, D, GH), lambda n, qi, g, kv: (g, 0, 0)),         # Wk group slice
            pl.BlockSpec((1, D, GH), lambda n, qi, g, kv: (g, 0, 0)),         # Wv group slice
            pl.BlockSpec((1, 1, GH), lambda n, qi, g, kv: (g, 0, 0)),         # content bias slice
            pl.BlockSpec((1, GH, D), lambda n, qi, g, kv: (g, 0, 0)),         # Wo^T group rows
            pl.BlockSpec((1, D), lambda n, qi, g, kv: (0, 0)),                # Wo bias
            pl.BlockSpec((1, D), lambda n, qi, g, kv: (0, 0)),                # LN gamma
            pl.BlockSpec((1, D), lambda n, qi, g, kv: (0, 0)),                # LN beta
        ],
        out_specs=pl.BlockSpec((1, block_q, D), lambda n, qi, g, kv: (n, qi, 0)),
        scratch_shapes=[
            pltpu.VMEM((block_q, GH), compute_dtype),   # Q (content bias folded in)
            pltpu.VMEM((G, block_q, 1), jnp.float32),   # running max per head
            pltpu.VMEM((G, block_q, 1), jnp.float32),   # running denom per head
            pltpu.VMEM((block_q, GH), jnp.float32),     # unnormalized attention output
            pltpu.VMEM((block_q, D), jnp.float32),      # cross-head output-projection acc
        ],
        compiler_params=pltpu.CompilerParams(
            dimension_semantics=("parallel", "parallel", "arbitrary", "arbitrary"),
            vmem_limit_bytes=vmem_limit),
    )(x, x, wq_g, wk_g, wv_g, cb_g, wo_t_g, wob2, gamma2, beta2)


def attention_reference(x, params, *, h, eps=1e-5):
    """Pure-JAX f32 reference mirroring the PyTorch forward (eval mode)."""
    wq, wk, wv, cb, wo_w, wo_b, gamma, beta = params
    N, L, D = x.shape
    H = D // h

    def split_heads(t):
        return t.reshape(N, L, h, H).transpose(0, 2, 1, 3)        # (N, h, L, H)

    q = split_heads(x @ wq)
    k = split_heads(x @ wk)
    v = split_heads(x @ wv)
    cb4 = jnp.broadcast_to(cb.reshape(1, h, 1, H), (N, h, L, H))

    A = jnp.einsum('nhld,nhmd->nhlm', q, k) + jnp.einsum('nhld,nhmd->nhlm', cb4, k)
    p = jax.nn.softmax(A, axis=-1)
    Oh = jnp.einsum('nhlm,nhmd->nhld', p, v)
    O = Oh.transpose(0, 2, 1, 3).reshape(N, L, D)
    res = x + (O @ wo_w.T + wo_b)
    mean = res.mean(-1, keepdims=True)
    var = ((res - mean) ** 2).mean(-1, keepdims=True)
    return (res - mean) / jnp.sqrt(var + eps) * gamma + beta


if __name__ == "__main__":
    # Small shapes consistent with the module; L=16 with 8-wide tiles exercises
    # 2 query tiles x 2 head groups x 2 KV tiles of the flash/group structure.
    N, L, D, h = 2, 16, 32, 4

    key = jax.random.PRNGKey(0)
    kx, ky, kq, kk, kv_, kcb, kwo, kwb = jax.random.split(key, 8)

    X = jax.random.normal(kx, (N, L, D), dtype=jnp.float32)
    Y = jax.random.normal(ky, (N, L, D), dtype=jnp.float32)

    # kaiming_uniform(a=sqrt(5)) ~ U(-1/sqrt(fan_in), 1/sqrt(fan_in)).
    bound = 1.0 / jnp.sqrt(jnp.float32(D))
    Wq = jax.random.uniform(kq, (D, D), jnp.float32, -bound, bound)
    Wk = jax.random.uniform(kk, (D, D), jnp.float32, -bound, bound)
    Wv = jax.random.uniform(kv_, (D, D), jnp.float32, -bound, bound)
    # Module inits cb to zeros; use a small random vector so the bias path is exercised.
    cb = 0.1 * jax.random.uniform(kcb, (D,), jnp.float32, -1.0, 1.0)
    Wo_w = jax.random.uniform(kwo, (D, D), jnp.float32, -bound, bound)   # (out, in)
    Wo_b = jax.random.uniform(kwb, (D,), jnp.float32, -bound, bound)
    gamma = jnp.ones((D,), jnp.float32)
    beta = jnp.zeros((D,), jnp.float32)
    params = (Wq, Wk, Wv, cb, Wo_w, Wo_b, gamma, beta)

    ref = attention_reference(X, params, h=h)

    # 1) f32 compute path: tight semantic check against the torch-equivalent reference.
    out_f32 = attention_forward(X, Y, params, h=h, heads_per_group=2,
                                block_q=8, block_kv=8, compute_dtype=jnp.float32)
    out_f32 = jax.block_until_ready(out_f32)
    assert out_f32.shape == (N, L, D)
    err32 = jnp.max(jnp.abs(out_f32 - ref))
    assert jnp.allclose(out_f32, ref, atol=1e-3, rtol=1e-3), f"f32 max abs err = {err32}"

    # 2) bf16 MXU-operand path (perf default): f32 accumulation/softmax; looser
    #    tolerance reflects bf16 operand quantization only.
    out_bf16 = attention_forward(X, Y, params, h=h, heads_per_group=2,
                                 block_q=8, block_kv=8, compute_dtype=jnp.bfloat16)
    out_bf16 = jax.block_until_ready(out_bf16)
    err16 = jnp.max(jnp.abs(out_bf16 - ref))
    assert jnp.allclose(out_bf16, ref, atol=5e-2, rtol=5e-2), f"bf16 max abs err = {err16}"

    print("KERNEL_OK")
</pallas_src>

<mosaic_0001>
module attributes {stable_mosaic.version = 11 : i64} {
  func.func @attention_kernel(%arg0: i32, %arg1: i32, %arg2: i32, %arg3: i32, %arg4: memref<1x8x32xf32, #tpu.memory_space<vmem>>, %arg5: memref<1x8x32xf32, #tpu.memory_space<vmem>>, %arg6: memref<1x32x16xf32, #tpu.memory_space<vmem>>, %arg7: memref<1x32x16xf32, #tpu.memory_space<vmem>>, %arg8: memref<1x32x16xf32, #tpu.memory_space<vmem>>, %arg9: memref<1x1x16xf32, #tpu.memory_space<vmem>>, %arg10: memref<1x16x32xf32, #tpu.memory_space<vmem>>, %arg11: memref<1x32xf32, #tpu.memory_space<vmem>>, %arg12: memref<1x32xf32, #tpu.memory_space<vmem>>, %arg13: memref<1x32xf32, #tpu.memory_space<vmem>>, %arg14: memref<1x8x32xf32, #tpu.memory_space<vmem>>, %arg15: memref<8x16xf32, #tpu.memory_space<vmem>>, %arg16: memref<2x8x1xf32, #tpu.memory_space<vmem>>, %arg17: memref<2x8x1xf32, #tpu.memory_space<vmem>>, %arg18: memref<8x16xf32, #tpu.memory_space<vmem>>, %arg19: memref<8x32xf32, #tpu.memory_space<vmem>>) attributes {dimension_semantics = [#tpu.dimension_semantics<parallel>, #tpu.dimension_semantics<parallel>, #tpu.dimension_semantics<arbitrary>, #tpu.dimension_semantics<arbitrary>], iteration_bounds = array<i64: 2, 2, 2, 2>, scalar_prefetch = 0 : i64, scratch_operands = 5 : i64, tpu.core_type = #tpu.core_type<tc>, window_params = [{transform_indices = @transform_0, window_bounds = array<i64: 1, 8, 32>}, {transform_indices = @transform_1, window_bounds = array<i64: 1, 8, 32>}, {transform_indices = @transform_2, window_bounds = array<i64: 1, 32, 16>}, {transform_indices = @transform_3, window_bounds = array<i64: 1, 32, 16>}, {transform_indices = @transform_4, window_bounds = array<i64: 1, 32, 16>}, {transform_indices = @transform_5, window_bounds = array<i64: 1, 1, 16>}, {transform_indices = @transform_6, window_bounds = array<i64: 1, 16, 32>}, {pipeline_mode = #tpu.pipeline_mode<synchronous>, transform_indices = @transform_7, window_bounds = array<i64: 1, 32>}, {pipeline_mode = #tpu.pipeline_mode<synchronous>, transform_indices = @transform_8, window_bounds = array<i64: 1, 32>}, {pipeline_mode = #tpu.pipeline_mode<synchronous>, transform_indices = @transform_9, window_bounds = array<i64: 1, 32>}, {transform_indices = @transform_10, window_bounds = array<i64: 1, 8, 32>}]} {
    %c0_i32 = arith.constant 0 : i32
    %0 = arith.cmpi eq, %arg3, %c0_i32 : i32
    %1 = arith.extui %0 : i1 to i32
    %c0_i32_0 = arith.constant 0 : i32
    %2 = arith.cmpi ne, %1, %c0_i32_0 : i32
    scf.if %2 {
      %c0_51 = arith.constant 0 : index
      %c0_52 = arith.constant 0 : index
      %c0_53 = arith.constant 0 : index
      %79 = vector.load %arg4[%c0_51, %c0_52, %c0_53] : memref<1x8x32xf32, #tpu.memory_space<vmem>>, vector<1x8x32xf32>
      %80 = vector.shape_cast %79 : vector<1x8x32xf32> to vector<8x32xf32>
      %c0_54 = arith.constant 0 : index
      %c0_55 = arith.constant 0 : index
      %c0_56 = arith.constant 0 : index
      %81 = vector.load %arg6[%c0_54, %c0_55, %c0_56] : memref<1x32x16xf32, #tpu.memory_space<vmem>>, vector<1x32x16xf32>
      %82 = vector.shape_cast %81 : vector<1x32x16xf32> to vector<32x16xf32>
      %cst_57 = arith.constant dense<0.000000e+00> : vector<8x16xf32>
      %83 = tpu.matmul %80, %82, %cst_57 {dimension_numbers = #tpu.dot_dimension_numbers<[1], [0], [0], [1], [0, 0, 1, 1], [], []>} : vector<8x32xf32>, vector<32x16xf32>, vector<8x16xf32> -> vector<8x16xf32>
      %c0_58 = arith.constant 0 : index
      %c0_59 = arith.constant 0 : index
      %c0_60 = arith.constant 0 : index
      %84 = vector.load %arg9[%c0_58, %c0_59, %c0_60] : memref<1x1x16xf32, #tpu.memory_space<vmem>>, vector<1x1x16xf32>
      %85 = vector.shape_cast %84 : vector<1x1x16xf32> to vector<1x16xf32>
      %86 = vector.broadcast %85 : vector<1x16xf32> to vector<8x16xf32>
      %87 = arith.addf %83, %86 : vector<8x16xf32>
      %c0_61 = arith.constant 0 : index
      %c0_62 = arith.constant 0 : index
      %88 = vector.load %arg15[%c0_61, %c0_62] : memref<8x16xf32, #tpu.memory_space<vmem>>, vector<8x16xf32>
      tpu.vector_store %arg15[%c0_61, %c0_62], %87 {strides = array<i32>} : memref<8x16xf32, #tpu.memory_space<vmem>>, vector<8x16xf32>,
      %cst_63 = arith.constant 0xFF800000 : f32
      %89 = vector.broadcast %cst_63 : f32 to vector<2x8x1xf32>
      %c0_64 = arith.constant 0 : index
      %c0_65 = arith.constant 0 : index
      %c0_66 = arith.constant 0 : index
      %90 = vector.load %arg16[%c0_64, %c0_65, %c0_66] : memref<2x8x1xf32, #tpu.memory_space<vmem>>, vector<2x8x1xf32>
      tpu.vector_store %arg16[%c0_64, %c0_65, %c0_66], %89 {strides = array<i32>} : memref<2x8x1xf32, #tpu.memory_space<vmem>>, vector<2x8x1xf32>,
      %cst_67 = arith.constant 0.000000e+00 : f32
      %91 = vector.broadcast %cst_67 : f32 to vector<2x8x1xf32>
      %c0_68 = arith.constant 0 : index
      %c0_69 = arith.constant 0 : index
      %c0_70 = arith.constant 0 : index
      %92 = vector.load %arg17[%c0_68, %c0_69, %c0_70] : memref<2x8x1xf32, #tpu.memory_space<vmem>>, vector<2x8x1xf32>
      tpu.vector_store %arg17[%c0_68, %c0_69, %c0_70], %91 {strides = array<i32>} : memref<2x8x1xf32, #tpu.memory_space<vmem>>, vector<2x8x1xf32>,
      %cst_71 = arith.constant 0.000000e+00 : f32
      %93 = vector.broadcast %cst_71 : f32 to vector<8x16xf32>
      %c0_72 = arith.constant 0 : index
      %c0_73 = arith.constant 0 : index
      %94 = vector.load %arg18[%c0_72, %c0_73] : memref<8x16xf32, #tpu.memory_space<vmem>>, vector<8x16xf32>
      tpu.vector_store %arg18[%c0_72, %c0_73], %93 {strides = array<i32>} : memref<8x16xf32, #tpu.memory_space<vmem>>, vector<8x16xf32>,
    } else {
    }
    %c0 = arith.constant 0 : index
    %c0_1 = arith.constant 0 : index
    %c0_2 = arith.constant 0 : index
    %3 = vector.load %arg5[%c0, %c0_1, %c0_2] : memref<1x8x32xf32, #tpu.memory_space<vmem>>, vector<1x8x32xf32>
    %4 = vector.shape_cast %3 : vector<1x8x32xf32> to vector<8x32xf32>
    %c0_3 = arith.constant 0 : index
    %c0_4 = arith.constant 0 : index
    %c0_5 = arith.constant 0 : index
    %5 = vector.load %arg7[%c0_3, %c0_4, %c0_5] : memref<1x32x16xf32, #tpu.memory_space<vmem>>, vector<1x32x16xf32>
    %6 = vector.shape_cast %5 : vector<1x32x16xf32> to vector<32x16xf32>
    %cst = arith.constant dense<0.000000e+00> : vector<8x16xf32>
    %7 = tpu.matmul %4, %6, %cst {dimension_numbers = #tpu.dot_dimension_numbers<[1], [0], [0], [1], [0, 0, 1, 1], [], []>} : vector<8x32xf32>, vector<32x16xf32>, vector<8x16xf32> -> vector<8x16xf32>
    %c0_6 = arith.constant 0 : index
    %c0_7 = arith.constant 0 : index
    %c0_8 = arith.constant 0 : index
    %8 = vector.load %arg8[%c0_6, %c0_7, %c0_8] : memref<1x32x16xf32, #tpu.memory_space<vmem>>, vector<1x32x16xf32>
    %9 = vector.shape_cast %8 : vector<1x32x16xf32> to vector<32x16xf32>
    %cst_9 = arith.constant dense<0.000000e+00> : vector<8x16xf32>
    %10 = tpu.matmul %4, %9, %cst_9 {dimension_numbers = #tpu.dot_dimension_numbers<[1], [0], [0], [1], [0, 0, 1, 1], [], []>} : vector<8x32xf32>, vector<32x16xf32>, vector<8x16xf32> -> vector<8x16xf32>
    %c0_10 = arith.constant 0 : index
    %c0_11 = arith.constant 0 : index
    %11 = vector.load %arg15[%c0_10, %c0_11] : memref<8x16xf32, #tpu.memory_space<vmem>>, vector<8x16xf32>
    %12 = vector.extract_strided_slice %11 {offsets = [0, 0], sizes = [8, 8], strides = [1, 1]} : vector<8x16xf32> to vector<8x8xf32>
    %13 = vector.extract_strided_slice %7 {offsets = [0, 0], sizes = [8, 8], strides = [1, 1]} : vector<8x16xf32> to vector<8x8xf32>
    %cst_12 = arith.constant dense<0.000000e+00> : vector<8x8xf32>
    %14 = tpu.matmul %12, %13, %cst_12 {dimension_numbers = #tpu.dot_dimension_numbers<[1], [1], [0], [0], [0, 0, 1, 0], [], []>} : vector<8x8xf32>, vector<8x8xf32>, vector<8x8xf32> -> vector<8x8xf32>
    %c0_13 = arith.constant 0 : index
    %c0_14 = arith.constant 0 : index
    %c0_15 = arith.constant 0 : index
    %15 = vector.load %arg16[%c0_13, %c0_14, %c0_15] : memref<2x8x1xf32, #tpu.memory_space<vmem>>, vector<1x8x1xf32>
    %16 = vector.shape_cast %15 : vector<1x8x1xf32> to vector<8x1xf32>
    %cst_16 = arith.constant dense<0xFF800000> : vector<8xf32>
    %17 = vector.multi_reduction <maximumf>, %14, %cst_16 [1] : vector<8x8xf32> to vector<8xf32>
    %18 = vector.shape_cast %17 : vector<8xf32> to vector<8x1xf32>
    %19 = arith.maximumf %16, %18 : vector<8x1xf32>
    %20 = arith.subf %16, %19 : vector<8x1xf32>
    %21 = math.exp %20 : vector<8x1xf32>
    %22 = vector.broadcast %19 : vector<8x1xf32> to vector<8x8xf32>
    %23 = arith.subf %14, %22 : vector<8x8xf32>
    %24 = math.exp %23 : vector<8x8xf32>
    %c0_17 = arith.constant 0 : index
    %c0_18 = arith.constant 0 : index
    %c0_19 = arith.constant 0 : index
    %25 = vector.load %arg17[%c0_17, %c0_18, %c0_19] : memref<2x8x1xf32, #tpu.memory_space<vmem>>, vector<1x8x1xf32>
    %26 = vector.shape_cast %25 : vector<1x8x1xf32> to vector<8x1xf32>
    %27 = arith.mulf %21, %26 : vector<8x1xf32>
    %cst_20 = arith.constant dense<0.000000e+00> : vector<8xf32>
    %28 = vector.multi_reduction <add>, %24, %cst_20 [1] : vector<8x8xf32> to vector<8xf32>
    %29 = vector.shape_cast %28 : vector<8xf32> to vector<8x1xf32>
    %30 = arith.addf %27, %29 : vector<8x1xf32>
    %c0_21 = arith.constant 0 : index
    %c0_22 = arith.constant 0 : index
    %c0_23 = arith.constant 0 : index
    %31 = vector.load %arg17[%c0_21, %c0_22, %c0_23] : memref<2x8x1xf32, #tpu.memory_space<vmem>>, vector<1x8x1xf32>
    %32 = vector.shape_cast %31 : vector<1x8x1xf32> to vector<8x1xf32>
    %33 = vector.shape_cast %30 : vector<8x1xf32> to vector<1x8x1xf32>
    tpu.vector_store %arg17[%c0_21, %c0_22, %c0_23], %33 {strides = array<i32>} : memref<2x8x1xf32, #tpu.memory_space<vmem>>, vector<1x8x1xf32>,
    %34 = vector.extract_strided_slice %10 {offsets = [0, 0], sizes = [8, 8], strides = [1, 1]} : vector<8x16xf32> to vector<8x8xf32>
    %cst_24 = arith.constant dense<0.000000e+00> : vector<8x8xf32>
    %35 = tpu.matmul %24, %34, %cst_24 {dimension_numbers = #tpu.dot_dimension_numbers<[1], [0], [0], [1], [0, 0, 1, 1], [], []>} : vector<8x8xf32>, vector<8x8xf32>, vector<8x8xf32> -> vector<8x8xf32>
    %c0_25 = arith.constant 0 : index
    %c0_26 = arith.constant 0 : index
    %36 = vector.load %arg18[%c0_25, %c0_26] : memref<8x16xf32, #tpu.memory_space<vmem>>, vector<8x8xf32>
    %37 = vector.broadcast %21 : vector<8x1xf32> to vector<8x8xf32>
    %38 = arith.mulf %37, %36 : vector<8x8xf32>
    %39 = arith.addf %38, %35 : vector<8x8xf32>
    %c0_27 = arith.constant 0 : index
    %c0_28 = arith.constant 0 : index
    %40 = vector.load %arg18[%c0_27, %c0_28] : memref<8x16xf32, #tpu.memory_space<vmem>>, vector<8x8xf32>
    tpu.vector_store %arg18[%c0_27, %c0_28], %39 {strides = array<i32>} : memref<8x16xf32, #tpu.memory_space<vmem>>, vector<8x8xf32>,
    %c0_29 = arith.constant 0 : index
    %c0_30 = arith.constant 0 : index
    %c0_31 = arith.constant 0 : index
    %41 = vector.load %arg16[%c0_29, %c0_30, %c0_31] : memref<2x8x1xf32, #tpu.memory_space<vmem>>, vector<1x8x1xf32>
    %42 = vector.shape_cast %41 : vector<1x8x1xf32> to vector<8x1xf32>
    %43 = vector.shape_cast %19 : vector<8x1xf32> to vector<1x8x1xf32>
    tpu.vector_store %arg16[%c0_29, %c0_30, %c0_31], %43 {strides = array<i32>} : memref<2x8x1xf32, #tpu.memory_space<vmem>>, vector<1x8x1xf32>,
    %44 = vector.extract_strided_slice %11 {offsets = [0, 8], sizes = [8, 8], strides = [1, 1]} : vector<8x16xf32> to vector<8x8xf32>
    %45 = vector.extract_strided_slice %7 {offsets = [0, 8], sizes = [8, 8], strides = [1, 1]} : vector<8x16xf32> to vector<8x8xf32>
    %cst_32 = arith.constant dense<0.000000e+00> : vector<8x8xf32>
    %46 = tpu.matmul %44, %45, %cst_32 {dimension_numbers = #tpu.dot_dimension_numbers<[1], [1], [0], [0], [0, 0, 1, 0], [], []>} : vector<8x8xf32>, vector<8x8xf32>, vector<8x8xf32> -> vector<8x8xf32>
    %c1 = arith.constant 1 : index
    %c0_33 = arith.constant 0 : index
    %c0_34 = arith.constant 0 : index
    %47 = vector.load %arg16[%c1, %c0_33, %c0_34] : memref<2x8x1xf32, #tpu.memory_space<vmem>>, vector<1x8x1xf32>
    %48 = vector.shape_cast %47 : vector<1x8x1xf32> to vector<8x1xf32>
    %cst_35 = arith.constant dense<0xFF800000> : vector<8xf32>
    %49 = vector.multi_reduction <maximumf>, %46, %cst_35 [1] : vector<8x8xf32> to vector<8xf32>
    %50 = vector.shape_cast %49 : vector<8xf32> to vector<8x1xf32>
    %51 = arith.maximumf %48, %50 : vector<8x1xf32>
    %52 = arith.subf %48, %51 : vector<8x1xf32>
    %53 = math.exp %52 : vector<8x1xf32>
    %54 = vector.broadcast %51 : vector<8x1xf32> to vector<8x8xf32>
    %55 = arith.subf %46, %54 : vector<8x8xf32>
    %56 = math.exp %55 : vector<8x8xf32>
    %c1_36 = arith.constant 1 : index
    %c0_37 = arith.constant 0 : index
    %c0_38 = arith.constant 0 : index
    %57 = vector.load %arg17[%c1_36, %c0_37, %c0_38] : memref<2x8x1xf32, #tpu.memory_space<vmem>>, vector<1x8x1xf32>
    %58 = vector.shape_cast %57 : vector<1x8x1xf32> to vector<8x1xf32>
    %59 = arith.mulf %53, %58 : vector<8x1xf32>
    %cst_39 = arith.constant dense<0.000000e+00> : vector<8xf32>
    %60 = vector.multi_reduction <add>, %56, %cst_39 [1] : vector<8x8xf32> to vector<8xf32>
    %61 = vector.shape_cast %60 : vector<8xf32> to vector<8x1xf32>
    %62 = arith.addf %59, %61 : vector<8x1xf32>
    %c1_40 = arith.constant 1 : index
    %c0_41 = arith.constant 0 : index
    %c0_42 = arith.constant 0 : index
    %63 = vector.load %arg17[%c1_40, %c0_41, %c0_42] : memref<2x8x1xf32, #tpu.memory_space<vmem>>, vector<1x8x1xf32>
    %64 = vector.shape_cast %63 : vector<1x8x1xf32> to vector<8x1xf32>
    %65 = vector.shape_cast %62 : vector<8x1xf32> to vector<1x8x1xf32>
    tpu.vector_store %arg17[%c1_40, %c0_41, %c0_42], %65 {strides = array<i32>} : memref<2x8x1xf32, #tpu.memory_space<vmem>>, vector<1x8x1xf32>,
    %66 = vector.extract_strided_slice %10 {offsets = [0, 8], sizes = [8, 8], strides = [1, 1]} : vector<8x16xf32> to vector<8x8xf32>
    %cst_43 = arith.constant dense<0.000000e+00> : vector<8x8xf32>
    %67 = tpu.matmul %56, %66, %cst_43 {dimension_numbers = #tpu.dot_dimension_numbers<[1], [0], [0], [1], [0, 0, 1, 1], [], []>} : vector<8x8xf32>, vector<8x8xf32>, vector<8x8xf32> -> vector<8x8xf32>
    %c0_44 = arith.constant 0 : index
    %c8 = arith.constant 8 : index
    %68 = vector.load %arg18[%c0_44, %c8] : memref<8x16xf32, #tpu.memory_space<vmem>>, vector<8x8xf32>
    %69 = vector.broadcast %53 : vector<8x1xf32> to vector<8x8xf32>
    %70 = arith.mulf %69, %68 : vector<8x8xf32>
    %71 = arith.addf %70, %67 : vector<8x8xf32>
    %c0_45 = arith.constant 0 : index
    %c8_46 = arith.constant 8 : index
    %72 = vector.load %arg18[%c0_45, %c8_46] : memref<8x16xf32, #tpu.memory_space<vmem>>, vector<8x8xf32>
    tpu.vector_store %arg18[%c0_45, %c8_46], %71 {strides = array<i32>} : memref<8x16xf32, #tpu.memory_space<vmem>>, vector<8x8xf32>,
    %c1_47 = arith.constant 1 : index
    %c0_48 = arith.constant 0 : index
    %c0_49 = arith.constant 0 : index
    %73 = vector.load %arg16[%c1_47, %c0_48, %c0_49] : memref<2x8x1xf32, #tpu.memory_space<vmem>>, vector<1x8x1xf32>
    %74 = vector.shape_cast %73 : vector<1x8x1xf32> to vector<8x1xf32>
    %75 = vector.shape_cast %51 : vector<8x1xf32> to vector<1x8x1xf32>
    tpu.vector_store %arg16[%c1_47, %c0_48, %c0_49], %75 {strides = array<i32>} : memref<2x8x1xf32, #tpu.memory_space<vmem>>, vector<1x8x1xf32>,
    %c1_i32 = arith.constant 1 : i32
    %76 = arith.cmpi eq, %arg3, %c1_i32 : i32
    %77 = arith.extui %76 : i1 to i32
    %c0_i32_50 = arith.constant 0 : i32
    %78 = arith.cmpi ne, %77, %c0_i32_50 : i32
    scf.if %78 {
      %c0_51 = arith.constant 0 : index
      %c0_52 = arith.constant 0 : index
      %c0_53 = arith.constant 0 : index
      %79 = vector.load %arg17[%c0_51, %c0_52, %c0_53] : memref<2x8x1xf32, #tpu.memory_space<vmem>>, vector<1x8x1xf32>
      %80 = vector.shape_cast %79 : vector<1x8x1xf32> to vector<8x1xf32>
      %81 = tpu.reciprocal %80 : vector<8x1xf32> -> vector<8x1xf32>
      %c0_54 = arith.constant 0 : index
      %c0_55 = arith.constant 0 : index
      %82 = vector.load %arg18[%c0_54, %c0_55] : memref<8x16xf32, #tpu.memory_space<vmem>>, vector<8x8xf32>
      %83 = vector.broadcast %81 : vector<8x1xf32> to vector<8x8xf32>
      %84 = arith.mulf %82, %83 : vector<8x8xf32>
      %c0_56 = arith.constant 0 : index
      %c0_57 = arith.constant 0 : index
      %85 = vector.load %arg18[%c0_56, %c0_57] : memref<8x16xf32, #tpu.memory_space<vmem>>, vector<8x8xf32>
      tpu.vector_store %arg18[%c0_56, %c0_57], %84 {strides = array<i32>} : memref<8x16xf32, #tpu.memory_space<vmem>>, vector<8x8xf32>,
      %c1_58 = arith.constant 1 : index
      %c0_59 = arith.constant 0 : index
      %c0_60 = arith.constant 0 : index
      %86 = vector.load %arg17[%c1_58, %c0_59, %c0_60] : memref<2x8x1xf32, #tpu.memory_space<vmem>>, vector<1x8x1xf32>
      %87 = vector.shape_cast %86 : vector<1x8x1xf32> to vector<8x1xf32>
      %88 = tpu.reciprocal %87 : vector<8x1xf32> -> vector<8x1xf32>
      %c0_61 = arith.constant 0 : index
      %c8_62 = arith.constant 8 : index
      %89 = vector.load %arg18[%c0_61, %c8_62] : memref<8x16xf32, #tpu.memory_space<vmem>>, vector<8x8xf32>
      %90 = vector.broadcast %88 : vector<8x1xf32> to vector<8x8xf32>
      %91 = arith.mulf %89, %90 : vector<8x8xf32>
      %c0_63 = arith.constant 0 : index
      %c8_64 = arith.constant 8 : index
      %92 = vector.load %arg18[%c0_63, %c8_64] : memref<8x16xf32, #tpu.memory_space<vmem>>, vector<8x8xf32>
      tpu.vector_store %arg18[%c0_63, %c8_64], %91 {strides = array<i32>} : memref<8x16xf32, #tpu.memory_space<vmem>>, vector<8x8xf32>,
      %c0_65 = arith.constant 0 : index
      %c0_66 = arith.constant 0 : index
      %93 = vector.load %arg18[%c0_65, %c0_66] : memref<8x16xf32, #tpu.memory_space<vmem>>, vector<8x16xf32>
      %c0_67 = arith.constant 0 : index
      %c0_68 = arith.constant 0 : index
      %c0_69 = arith.constant 0 : index
      %94 = vector.load %arg10[%c0_67, %c0_68, %c0_69] : memref<1x16x32xf32, #tpu.memory_space<vmem>>, vector<1x16x32xf32>
      %95 = vector.shape_cast %94 : vector<1x16x32xf32> to vector<16x32xf32>
      %cst_70 = arith.constant dense<0.000000e+00> : vector<8x32xf32>
      %96 = tpu.matmul %93, %95, %cst_70 {dimension_numbers = #tpu.dot_dimension_numbers<[1], [0], [0], [1], [0, 0, 1, 1], [], []>} : vector<8x16xf32>, vector<16x32xf32>, vector<8x32xf32> -> vector<8x32xf32>
      %c0_i32_71 = arith.constant 0 : i32
      %97 = arith.cmpi eq, %arg2, %c0_i32_71 : i32
      %98 = arith.extui %97 : i1 to i32
      %c0_i32_72 = arith.constant 0 : i32
      %99 = arith.cmpi ne, %98, %c0_i32_72 : i32
      scf.if %99 {
        %c0_77 = arith.constant 0 : index
        %c0_78 = arith.constant 0 : index
        %106 = vector.load %arg19[%c0_77, %c0_78] : memref<8x32xf32, #tpu.memory_space<vmem>>, vector<8x32xf32>
        tpu.vector_store %arg19[%c0_77, %c0_78], %96 {strides = array<i32>} : memref<8x32xf32, #tpu.memory_space<vmem>>, vector<8x32xf32>,
      } else {
      }
      %c0_i32_73 = arith.constant 0 : i32
      %100 = arith.cmpi sgt, %arg2, %c0_i32_73 : i32
      %101 = arith.extui %100 : i1 to i32
      %c0_i32_74 = arith.constant 0 : i32
      %102 = arith.cmpi ne, %101, %c0_i32_74 : i32
      scf.if %102 {
        %c0_77 = arith.constant 0 : index
        %c0_78 = arith.constant 0 : index
        %106 = vector.load %arg19[%c0_77, %c0_78] : memref<8x32xf32, #tpu.memory_space<vmem>>, vector<8x32xf32>
        %107 = arith.addf %106, %96 : vector<8x32xf32>
        %c0_79 = arith.constant 0 : index
        %c0_80 = arith.constant 0 : index
        %108 = vector.load %arg19[%c0_79, %c0_80] : memref<8x32xf32, #tpu.memory_space<vmem>>, vector<8x32xf32>
        tpu.vector_store %arg19[%c0_79, %c0_80], %107 {strides = array<i32>} : memref<8x32xf32, #tpu.memory_space<vmem>>, vector<8x32xf32>,
      } else {
      }
      %c1_i32_75 = arith.constant 1 : i32
      %103 = arith.cmpi eq, %arg2, %c1_i32_75 : i32
      %104 = arith.extui %103 : i1 to i32
      %c0_i32_76 = arith.constant 0 : i32
      %105 = arith.cmpi ne, %104, %c0_i32_76 : i32
      scf.if %105 {
        %c0_77 = arith.constant 0 : index
        %c0_78 = arith.constant 0 : index
        %c0_79 = arith.constant 0 : index
        %106 = vector.load %arg4[%c0_77, %c0_78, %c0_79] : memref<1x8x32xf32, #tpu.memory_space<vmem>>, vector<1x8x32xf32>
        %107 = vector.shape_cast %106 : vector<1x8x32xf32> to vector<8x32xf32>
        %c0_80 = arith.constant 0 : index
        %c0_81 = arith.constant 0 : index
        %108 = vector.load %arg19[%c0_80, %c0_81] : memref<8x32xf32, #tpu.memory_space<vmem>>, vector<8x32xf32>
        %c0_82 = arith.constant 0 : index
        %c0_83 = arith.constant 0 : index
        %109 = vector.load %arg11[%c0_82, %c0_83] : memref<1x32xf32, #tpu.memory_space<vmem>>, vector<1x32xf32>
        %110 = vector.broadcast %109 : vector<1x32xf32> to vector<8x32xf32>
        %111 = arith.addf %108, %110 : vector<8x32xf32>
        %112 = arith.addf %107, %111 : vector<8x32xf32>
        %cst_84 = arith.constant dense<0.000000e+00> : vector<8xf32>
        %113 = vector.multi_reduction <add>, %112, %cst_84 [1] : vector<8x32xf32> to vector<8xf32>
        %114 = vector.shape_cast %113 : vector<8xf32> to vector<8x1xf32>
        %cst_85 = arith.constant 3.200000e+01 : f32
        %115 = vector.broadcast %cst_85 : f32 to vector<8x1xf32>
        %116 = arith.divf %114, %115 : vector<8x1xf32>
        %117 = vector.broadcast %116 : vector<8x1xf32> to vector<8x32xf32>
        %118 = arith.subf %112, %117 : vector<8x32xf32>
        %119 = arith.mulf %118, %118 : vector<8x32xf32>
        %cst_86 = arith.constant dense<0.000000e+00> : vector<8xf32>
        %120 = vector.multi_reduction <add>, %119, %cst_86 [1] : vector<8x32xf32> to vector<8xf32>
        %121 = vector.shape_cast %120 : vector<8xf32> to vector<8x1xf32>
        %cst_87 = arith.constant 3.200000e+01 : f32
        %122 = vector.broadcast %cst_87 : f32 to vector<8x1xf32>
        %123 = arith.divf %121, %122 : vector<8x1xf32>
        %124 = vector.broadcast %116 : vector<8x1xf32> to vector<8x32xf32>
        %125 = arith.subf %112, %124 : vector<8x32xf32>
        %cst_88 = arith.constant 9.99999974E-6 : f32
        %126 = vector.broadcast %cst_88 : f32 to vector<8x1xf32>
        %127 = arith.addf %123, %126 : vector<8x1xf32>
        %128 = math.rsqrt %127 : vector<8x1xf32>
        %129 = vector.broadcast %128 : vector<8x1xf32> to vector<8x32xf32>
        %130 = arith.mulf %125, %129 : vector<8x32xf32>
        %c0_89 = arith.constant 0 : index
        %c0_90 = arith.constant 0 : index
        %131 = vector.load %arg12[%c0_89, %c0_90] : memref<1x32xf32, #tpu.memory_space<vmem>>, vector<1x32xf32>
        %132 = vector.broadcast %131 : vector<1x32xf32> to vector<8x32xf32>
        %133 = arith.mulf %130, %132 : vector<8x32xf32>
        %c0_91 = arith.constant 0 : index
        %c0_92 = arith.constant 0 : index
        %134 = vector.load %arg13[%c0_91, %c0_92] : memref<1x32xf32, #tpu.memory_space<vmem>>, vector<1x32xf32>
        %135 = vector.broadcast %134 : vector<1x32xf32> to vector<8x32xf32>
        %136 = arith.addf %133, %135 : vector<8x32xf32>
        %c0_93 = arith.constant 0 : index
        %c0_94 = arith.constant 0 : index
        %c0_95 = arith.constant 0 : index
        %137 = vector.load %arg14[%c0_93, %c0_94, %c0_95] : memref<1x8x32xf32, #tpu.memory_space<vmem>>, vector<1x8x32xf32>
        %138 = vector.shape_cast %137 : vector<1x8x32xf32> to vector<8x32xf32>
        %139 = vector.shape_cast %136 : vector<8x32xf32> to vector<1x8x32xf32>
        tpu.vector_store %arg14[%c0_93, %c0_94, %c0_95], %139 {strides = array<i32>} : memref<1x8x32xf32, #tpu.memory_space<vmem>>, vector<1x8x32xf32>,
      } else {
      }
    } else {
    }
    return
  }
  func.func @transform_0(%arg0: i32, %arg1: i32, %arg2: i32, %arg3: i32) -> (i32, i32, i32) {
    %c0_i32 = arith.constant 0 : i32
    %c0_i32_0 = arith.constant 0 : i32
    return %arg0, %arg1, %c0_i32 : i32, i32, i32
  }
  func.func @transform_1(%arg0: i32, %arg1: i32, %arg2: i32, %arg3: i32) -> (i32, i32, i32) {
    %c0_i32 = arith.constant 0 : i32
    %c0_i32_0 = arith.constant 0 : i32
    return %arg0, %arg3, %c0_i32 : i32, i32, i32
  }
  func.func @transform_2(%arg0: i32, %arg1: i32, %arg2: i32, %arg3: i32) -> (i32, i32, i32) {
    %c0_i32 = arith.constant 0 : i32
    %c0_i32_0 = arith.constant 0 : i32
    %c0_i32_1 = arith.constant 0 : i32
    return %arg2, %c0_i32, %c0_i32_0 : i32, i32, i32
  }
  func.func @transform_3(%arg0: i32, %arg1: i32, %arg2: i32, %arg3: i32) -> (i32, i32, i32) {
    %c0_i32 = arith.constant 0 : i32
    %c0_i32_0 = arith.constant 0 : i32
    %c0_i32_1 = arith.constant 0 : i32
    return %arg2, %c0_i32, %c0_i32_0 : i32, i32, i32
  }
  func.func @transform_4(%arg0: i32, %arg1: i32, %arg2: i32, %arg3: i32) -> (i32, i32, i32) {
    %c0_i32 = arith.constant 0 : i32
    %c0_i32_0 = arith.constant 0 : i32
    %c0_i32_1 = arith.constant 0 : i32
    return %arg2, %c0_i32, %c0_i32_0 : i32, i32, i32
  }
  func.func @transform_5(%arg0: i32, %arg1: i32, %arg2: i32, %arg3: i32) -> (i32, i32, i32) {
    %c0_i32 = arith.constant 0 : i32
    %c0_i32_0 = arith.constant 0 : i32
    %c0_i32_1 = arith.constant 0 : i32
    return %arg2, %c0_i32, %c0_i32_0 : i32, i32, i32
  }
  func.func @transform_6(%arg0: i32, %arg1: i32, %arg2: i32, %arg3: i32) -> (i32, i32, i32) {
    %c0_i32 = arith.constant 0 : i32
    %c0_i32_0 = arith.constant 0 : i32
    %c0_i32_1 = arith.constant 0 : i32
    return %arg2, %c0_i32, %c0_i32_0 : i32, i32, i32
  }
  func.func @transform_7(%arg0: i32, %arg1: i32, %arg2: i32, %arg3: i32) -> (i32, i32) {
    %c0_i32 = arith.constant 0 : i32
    %c0_i32_0 = arith.constant 0 : i32
    %c0_i32_1 = arith.constant 0 : i32
    return %c0_i32, %c0_i32_0 : i32, i32
  }
  func.func @transform_8(%arg0: i32, %arg1: i32, %arg2: i32, %arg3: i32) -> (i32, i32) {
    %c0_i32 = arith.constant 0 : i32
    %c0_i32_0 = arith.constant 0 : i32
    %c0_i32_1 = arith.constant 0 : i32
    return %c0_i32, %c0_i32_0 : i32, i32
  }
  func.func @transform_9(%arg0: i32, %arg1: i32, %arg2: i32, %arg3: i32) -> (i32, i32) {
    %c0_i32 = arith.constant 0 : i32
    %c0_i32_0 = arith.constant 0 : i32
    %c0_i32_1 = arith.constant 0 : i32
    return %c0_i32, %c0_i32_0 : i32, i32
  }
  func.func @transform_10(%arg0: i32, %arg1: i32, %arg2: i32, %arg3: i32) -> (i32, i32, i32) {
    %c0_i32 = arith.constant 0 : i32
    %c0_i32_0 = arith.constant 0 : i32
    return %arg0, %arg1, %c0_i32 : i32, i32, i32
  }
}

</mosaic_0001>

<bundles_post_ra>
// kernel: tpu_custom_call.1
= control target key start
LH: loop header
LB: loop body
LE: loop exit
PB: predicated region body
PF: predicated region fallthrough
CT: control target
= control target key end

     0   :  { %s2272_s0 = inlined_call_operand.vmem [shape: f32[2,16,32], index: 0, kind: input, shape index: {}]   ;;  %s2273_s1 = inlined_call_operand.vmem [shape: f32[2,16,32], index: 1, kind: input, shape index: {}]   ;;  %s2274_s2 = inlined_call_operand.vmem [shape: f32[2,32,16], index: 2, kind: input, shape index: {}]   ;;  %s2275_s3 = inlined_call_operand.vmem [shape: f32[2,32,16], index: 3, kind: input, shape index: {}]   ;;  %s2276_s4 = inlined_call_operand.vmem [shape: f32[2,32,16], index: 4, kind: input, shape index: {}]   ;;  %s2277_s5 = inlined_call_operand.vmem [shape: f32[2,1,16], index: 5, kind: input, shape index: {}]   ;;  %s2278_s6 = inlined_call_operand.vmem [shape: f32[2,16,32], index: 6, kind: input, shape index: {}]   ;;  %s2279_s7 = inlined_call_operand.vmem [shape: f32[1,32], index: 7, kind: input, shape index: {}]   ;;  %s2280_s8 = inlined_call_operand.vmem [shape: f32[1,32], index: 8, kind: input, shape index: {}]   ;;  %s2281_s9 = inlined_call_operand.vmem [shape: f32[1,32], index: 9, kind: input, shape index: {}]   ;;  %s2282_s10 = inlined_call_operand.hbm [shape: f32[2,16,32], index: 10, kind: output, shape index: {}]  }
   0x1   :  { %2300 = sst [smem:[#allocation26_spill]] %s2272_s0 }
   0x2   :  { %2301 = sst [smem:[#allocation27_spill]] %s2273_s1 }
   0x3   :  { %2302 = sst [smem:[#allocation28_spill]] %s2282_s10 }
   0x4   :  { %15 = vsyncpa [#allocation8], 0 }
   0x5   :  { %17 = vsyncpa [#allocation8 + $0x1], 0  ;;  %s1978_s13 = smov 0   ;;  %s1980_s14 = smov 0  }
   0x6   :  { %s1982_s15 = smov 0   ;;  %s1984_s16 = smov 0  }
   0x7   :  { %s1986_s17 = smov 0   ;;  %s1988_s18 = smov 0  }
   0x8   :  { %s1990_s19 = smov 0   ;;  %s1992_s20 = smov 0  }
   0x9   :  { %s1994_s21 = smov 0   ;;  %s1996_s22 = smov 0  }
   0xa   :  { %s1998_s23 = smov 0   ;;  %s2000_s24 = smov 0  }
   0xb LB: > { %2303 = sst [smem:[#allocation10_spill]] %s1862_s13  ;;  %s1493_s25 = sadd.s32 4294967295, %s1906_s24   ;;  %s1906_s24 = sphi %s2000_s24, %s23_s24   ;;  %s1902_s23 = sphi %s1998_s23, %s2341_s23   ;;  %s1898_s22 = sphi %s1996_s22, %s2340_s22   ;;  %s1894_s21 = sphi %s1994_s21, %s2339_s21   ;;  %s1890_s20 = sphi %s1992_s20, %s2338_s20   ;;  %s1886_s19 = sphi %s1990_s19, %s2337_s19   ;;  %s1882_s18 = sphi %s1988_s18, %s2336_s18   ;;  %s1878_s17 = sphi %s1986_s17, %s2335_s17   ;;  %s1874_s16 = sphi %s1984_s16, %s2334_s16   ;;  %s1870_s15 = sphi %s1982_s15, %s2333_s15   ;;  %s1866_s14 = sphi %s1980_s14, %s2332_s14   ;;  %s1862_s13 = sphi %s1978_s13, %s2331_s13  }
   0xc   : > { %2304 = sst [smem:[#allocation11_spill]] %s1866_s14  ;;  %s1494_s26 = sadd.s32 4294967294, %s1906_s24  }
   0xd   : > { %2305 = sst [smem:[#allocation12_spill]] %s1870_s15  ;;  %s38_s27 = sadd.s32 1, %s1890_s20 }
   0xe   : > { %2306 = sst [smem:[#allocation13_spill]] %s1882_s18  ;;  %p39_p0 = scmp.ge.s32.totalorder %s38_s27, 2 }
   0xf   : > { %2307 = sst [smem:[#allocation14_spill]] %s1890_s20  ;;  %s41_s28 = sadd.s32 1, %s1894_s21 }
  0x10   : > { %2308 = sst [smem:[#allocation15_spill]] %s1894_s21  ;;  %s45_s29 = sadd.s32 1, %s1898_s22 }
  0x11   : > { %2309 = sst [smem:[#allocation16_spill]] %s1898_s22  ;;  %s49_s30 = sadd.s32 1, %s1902_s23 }
  0x12   : > { %2310 = sst [smem:[#allocation17_spill]] %s1902_s23  ;;  %s2343_s27 = smov (%p39_p0, %s38_s27), 0 }
  0x13   : > { %2311 = sst [smem:[#allocation18_spill]] %s1906_s24  ;;  %s2345_s28 = smov (!%p39_p0, %s41_s28), %s1894_s21 }
  0x14   : > { %2312 = sst [smem:[#allocation19_spill]] %s2343_s27  ;;  %p317_p1 = scmp.ne.s32.totalorder %s1870_s15, %s1866_s14 }
  0x15   : > { %p318_p2 = scmp.eq.s32.totalorder %s1493_s25, 15  ;;  %p43_p3 = scmp.ge.s32.totalorder %s2345_s28, 2 }
  0x16   : > { %p323_p4 = scmp.ne.s32.totalorder %s1866_s14, %s1862_s13  ;;  %p324_p6 = scmp.eq.s32.totalorder %s1494_s26, 15 }
  0x17   : > { %p2051_p5 = por %p318_p2, %p317_p1  ;;  %s2347_s28 = smov (%p43_p3, %s2345_s28), 0 }
  0x18   : > { %2315 = sst [smem:[#allocation21_spill]] %s2347_s28  ;;  %s2349_s29 = smov (!%p43_p3, %s45_s29), %s1898_s22 }
  0x19   : > { %s2313_s11 = scalar_select %p2051_p5, 1, 0 }
  0x1a   : > { %p2058_p7 = por %p324_p6, %p323_p4  ;;  %p1497_p8 = scmp.ge.s32.totalorder %s1906_s24, 1 }
  0x1b   : > { %2314 = sst [smem:[#allocation20_spill]] %s2313_s11  ;;  %p47_p9 = scmp.ge.s32.totalorder %s2349_s29, 2 }
  0x1c   : > { %s2316_s12 = scalar_select %p2058_p7, 1, 0 }
  0x1d   : > { %p411_p10 = scmp.lt.s32.totalorder %s1906_s24, 17  ;;  %s2351_s29 = smov (%p47_p9, %s2349_s29), 0 }
  0x1e   : > { %2317 = sst [smem:[#allocation22_spill]] %s2316_s12  ;;  %s2353_s30 = smov (!%p47_p9, %s49_s30), %s1902_s23 }
  0x1f   : > { %2318 = sst [smem:[#allocation23_spill]] %s2351_s29  ;;  %p412_p11 = pnand %p1497_p8, %p411_p10 }
  0x20   : > { %p51_p12 = scmp.ge.s32.totalorder %s2353_s30, 2  ;;  %s303_s25 = ssub.s32 %s1898_s22, %s2351_s29 }
  0x21   : > { %s307_s27 = sadd.s32 1, %s1870_s15  ;;  %s2291_s29 = sand.u32 (!%p412_p11), 1, %s1866_s14  }
  0x22   : > { %s2355_s30 = smov (%p51_p12, %s2353_s30), 0  ;;  %p483_p0 = scmp.lt.s32.totalorder (!%p412_p11), %s1886_s19, 1 }
  0x23   : > { %2319 = sst [smem:[#allocation24_spill]] %s2355_s30  ;;  %s302_s26 = ssub.s32 %s1902_s23, %s2355_s30 }
  0x24   : > { %s304_s28 = sor.u32 %s303_s25, %s302_s26  ;;  %415 = sbr.rel (%p412_p11) target bundleno = 2053 (0x805), region = 60 }
  0x25   : > { %p305_p13 = scmp.eq.s32.totalorder %s304_s28, 0  ;;  %s2081_s30 = sshll.u32 (!%p412_p11), %s2291_s29, 3 }
  0x26   : > { %p485_p1 = scmp.lt.s32.totalorder (!%p412_p11), %s1882_s18, 1  ;;  %p493_p2 = scmp.lt.s32.totalorder (!%p412_p11), %s1874_s16, 1 }
  0x27   : > { %s2075_s21 = scalar_select %p305_p13, %s1870_s15, %s307_s27  }
  0x28   : > { %p499_p3 = scmp.lt.s32.totalorder (!%p412_p11), %s1878_s17, 1  ;;  %s2321_s0 = sld [smem:[#allocation26_spill]] (!%p412_p11) }
  0x29   : > { %2320 = sst [smem:[#allocation25_spill]] %s2075_s21  ;;  %s2322_s1 = sld [smem:[#allocation27_spill]] (!%p412_p11) }
  0x2a   : > { %p1511_p4 = scmp.ne.s32.totalorder (!%p412_p11), %s1874_s16, 0 }
  0x2b   : > { %s484_s28 = scalar_select %p483_p0, %s1886_s19, 1 }
  0x2c   : > { %s486_s27 = scalar_select %p485_p1, %s1882_s18, 1 }
  0x2d   : > { %s1499_s25 = sshll.u32 %s484_s28, 1  ;;  %v1908_v3 = vmov (!%p1511_p4), 0.0|0.0   ;;  %vm1909_vm0 = vmmov (!%p1511_p4), 0   ;;  %v1910_v6 = vmov (!%p1511_p4), 0.0   ;;  %vm614_vm1 = vcmask (!%p1511_p4), 7168  }
  0x2e   : > { %s488_s26 = sadd.s32 %s1499_s25, %s486_s27  ;;  %1625 = vmatprep.subr.bf16.mxu0 (!%p1511_p4), %v1908_v3  ;;  %1573 = vmatprep.mubr.msk.f32.mxu0 (!%p1511_p4), %vm1909_vm0, %v1910_v6  ;;  %v1911_v7 = vmov (!%p1511_p4), -inf   ;;  %617 = vst.msk [vmem:[#allocation4] sm:$0xff] (!%p1511_p4), %vm614_vm1, %v1910_v6  ;;  %618 = vst.msk [vmem:[#allocation4 + $0x8] sm:$0xff] (!%p1511_p4), %vm614_vm1, %v1910_v6  ;;  %vm538_vm2 = vcmask (!%p1511_p4), 261120   ;;  %vm612_vm3 = vcmask (!%p1511_p4), 130048  }
  0x2f   : > { %s1500_s23 = sshll.u32 %s488_s26, 3  ;;  %s482_s26 = scalar_lea.vmem [#allocation7], %s2081_s30  ;;  %615 = vst.msk [vmem:[#allocation3] sm:$0xff] (!%p1511_p4), %vm614_vm1, %v1911_v7  ;;  %616 = vst.msk [vmem:[#allocation3 + $0x8] sm:$0xff] (!%p1511_p4), %vm614_vm1, %v1911_v7 }
  0x30   : > { %s2091_s21 = scalar_lea.vmem %s2321_s0, %s1500_s23  ;;  %619 = vst.msk [vmem:[#allocation5] sm:$0xff] (!%p1511_p4), %vm612_vm3, %v1910_v6 }
  0x31   : > { %s494_s15 = scalar_select %p493_p2, %s1874_s16, 1 }
  0x32   : > { %s2095_s12 = scalar_select %p499_p3, %s1878_s17, 1 }
  0x33   : > { %s496_s29 = sadd.s32 %s1499_s25, %s494_s15  ;;  %525 = sbr.rel (%p1511_p4) target bundleno = 279 (0x117), region = 64  ;;  %v526_v9 = vld [vmem:[%s2091_s21] sm:$0xff] (!%p1511_p4) }
  0x34   : > { %s1502_s13 = sshll.u32 %s496_s29, 3  ;;  %s1535_s24 = sshll.u32 %s2095_s12, 5 }
  0x35   : > { %s2101_s27 = scalar_lea.vmem %s2322_s1, %s1502_s13  ;;  %s503_s20 = scalar_lea.vmem %s2274_s2, %s1535_s24 }
  0x36   : > { %s2109_s0 = scalar_lea.vmem %s2275_s3, %s1535_s24  ;;  %s2114_s15 = scalar_lea.vmem %s2276_s4, %s1535_s24  ;;  %v527_v0 = vld [vmem:[%s503_s20] sm:$0xff] (!%p1511_p4)  ;;  %v528_v1 = vld [vmem:[%s503_s20 + $0x8] sm:$0xff] (!%p1511_p4)  ;;  %v529_v2 = vld [vmem:[%s503_s20 + $0x10] sm:$0xff] (!%p1511_p4) }
  0x37   : > { %s516_s10 = scalar_lea.vmem %s2277_s5, %s2095_s12  ;;  %s1538_s13 = sshll.u32 %s2095_s12, 4  ;;  %v1626_v4 = vpack.c.bf16 (!%p1511_p4), %v528_v1, %v527_v0  ;;  %v530_v5 = vld [vmem:[%s503_s20 + $0x18] sm:$0xff] (!%p1511_p4) }
  0x38   : > { %s2124_s11 = scalar_lea.vmem %s2278_s6, %s1538_s13  ;;  %v1629_v8 = vpack.c.bf16 (!%p1511_p4), %v530_v5, %v529_v2  ;;  %v1512_v10 = vld [vmem:[%s516_s10] ss:$0 sm:$0xff] (!%p1511_p4) }
  0x39   : > { %1627 = vmatpush3.bf16.msra.mxu0 (!%p1511_p4), %v1626_v4 }
  0x3a   : > { %1628 = vmatprep.subr.bf16.mxu0 %v1908_v3 }
  0x3d   : > { %1630 = vmatpush3.bf16.msra.mxu0 %v1629_v8 }
  0x40   : > { %1574 = vmatmul.mubr.msk.f32.vlgmr.msra.gmra.mrb[0].mxu0 %vm538_vm2, %v526_v9 }
 0x113   : > { %v608_v11 = vpop.f32.mrb[0].mxu0 }
 0x114   : > { %v609_v12 = vadd.f32 %v1512_v10, %v608_v11  ;;  %v1575_v13 = vpop.f32.mrb[1].mxu0 }
 0x116   : > { %613 = vst.msk [vmem:[#allocation2] sm:$0xff] %vm612_vm3, %v609_v12 }
 0x117 PF: > { %v621_v14 = vld [vmem:[%s2109_s0] sm:$0xff]  ;;  %v622_v15 = vld [vmem:[%s2109_s0 + $0x8] sm:$0xff]  ;;  %v623_v16 = vld [vmem:[%s2109_s0 + $0x10] sm:$0xff]  ;;  %v1912_v17 = vmov 0.0|0.0   ;;  %vm1913_vm4 = vmmov 0   ;;  %v1914_v20 = vmov 0.0  }
 0x118   : > { %1631 = vmatprep.subr.bf16.mxu0 %v1912_v17  ;;  %v1632_v18 = vpack.c.bf16 %v622_v15, %v621_v14  ;;  %v624_v19 = vld [vmem:[%s2109_s0 + $0x18] sm:$0xff]  ;;  %1584 = vmatprep.mubr.msk.f32.mxu0 %vm1913_vm4, %v1914_v20  ;;  %v620_v22 = vld [vmem:[%s2101_s27] sm:$0xff]  ;;  %vm625_vm5 = vcmask 261120   ;;  %vm774_vm6 = vcmask 64512   ;;  %s1915_s0 = smov 120   ;;  %v700_v27 = vld [vmem:[%s2114_s15 + $0x8] sm:$0xff] }
 0x119   : > { %1637 = vmatprep.subr.bf16.mxu1 %v1912_v17  ;;  %1595 = vmatprep.mubr.msk.f32.mxu1 %vm1913_vm4, %v1914_v20  ;;  %v1635_v21 = vpack.c.bf16 %v624_v19, %v623_v16  ;;  %v699_v26 = vld [vmem:[%s2114_s15] sm:$0xff]  ;;  %v701_v28 = vld [vmem:[%s2114_s15 + $0x10] sm:$0xff]  ;;  %v702_v30 = vld [vmem:[%s2114_s15 + $0x18] sm:$0xff]  ;;  %v1916_v37 = vmov 0   ;;  %vm873_vm7 = vcmask 7168   ;;  %s1917_s18 = smov 8  }
 0x11a   : > { %1633 = vmatpush3.bf16.msra.mxu0 %v1632_v18  ;;  %v1638_v29 = vpack.c.bf16 %v700_v27, %v699_v26  ;;  %v1641_v31 = vpack.c.bf16 %v702_v30, %v701_v28  ;;  %1763 = vset.pattern.permute.xlu0 %v1916_v37  ;;  %v851_v43 = vld [vmem:[#allocation3] sm:$0xff]  ;;  %v1037_v48 = vld [vmem:[#allocation3 + $0x8] sm:$0xff]  ;;  %v867_v2 = vld [vmem:[#allocation4] sm:$0xff]  ;;  %vm1150_vm8 = vcmask 130112   ;;  %p1522_p6 = scmp.ne.s32.totalorder %s1874_s16, 1 }
 0x11b   : > { %1634 = vmatprep.subr.bf16.mxu0 %v1912_v17  ;;  %1764 = vset.pattern.permute.xlu1 %v1916_v37  ;;  %v948_v6 = vld [vmem:[#allocation5] sm:$0xff]  ;;  %v1054_v12 = vld [vmem:[#allocation4 + $0x8] sm:$0xff]  ;;  %v1919_v30 = vmov (!%p1522_p6), 0.0|0.0   ;;  %vm1920_vm9 = vmmov (!%p1522_p6), 0   ;;  %vm1180_vm10 = vcmask (!%p1522_p6), 130048   ;;  %p1524_p8 = scmp.ne.s32.totalorder (!%p1522_p6), %s1878_s17, 0 }
 0x11c   : > { %1639 = vmatpush3.bf16.msra.mxu1 %v1638_v29  ;;  %v1178_v28 = vld [vmem:[%s2124_s11] sm:$0xff] (!%p1522_p6)  ;;  %v1179_v29 = vld [vmem:[%s2124_s11 + $0x8] sm:$0xff] (!%p1522_p6) }
 0x11d   : > { %v773_v25 = vld [vmem:[#allocation2] sm:$0xff]  ;;  %1640 = vmatprep.subr.bf16.mxu1 %v1912_v17 }
 0x11e   : > { %1636 = vmatpush3.bf16.msra.mxu0 %v1635_v21 }
 0x11f   : > { %1598 = vmatprep.subr.mxu0 %v1914_v20 }
 0x120   : > { %1642 = vmatpush3.bf16.msra.mxu1 %v1641_v31  ;;  %v1644_v31 = vpack.c.bf16 (!%p1522_p6), %v1179_v29, %v1178_v28 }
 0x121   : > { %1585 = vmatmul.mubr.msk.f32.vlgmr.msra.gmra.mrb[0].mxu0 %vm625_vm5, %v620_v22  ;;  %1603 = vmatprep.subr.mxu1 %v1914_v20 }
 0x122   : > { %1600 = vmatprep.mubr.msk.f32.mxu0 %vm1913_vm4, %v1914_v20 }
 0x123   : > { %1596 = vmatmul.mubr.msk.f32.vlgmr.msra.gmra.mrb[0].mxu1 %vm625_vm5, %v620_v22 }
 0x124   : > { %1605 = vmatprep.mubr.msk.f32.mxu1 %vm1913_vm4, %v1914_v20 }
 0x1f4   : > { %v695_v23 = vpop.f32.mrb[0].mxu0 }
 0x1f5   : > { %960 = vrot.lane.b32.xlu0 %v695_v23, %s1915_s0  ;;  %v1586_v24 = vpop.f32.mrb[1].mxu0  ;;  %1599 = vmatpush3.xpose.msk.msra.mxu0 %vm774_vm6, %v695_v23 }
 0x1f6   : > { %1608 = vmatprep.subr.mxu0 %v1914_v20  ;;  %v769_v38 = vpop.f32.mrb[0].mxu1 }
 0x1f7   : > { %v1597_v39 = vpop.f32.mrb[1].mxu1  ;;  %1604 = vmatpush3.msra.mxu1 %v769_v38 }
 0x1f8   : > { %1601 = vmatmul.mubr.msk.f32.vlgmr.msra.gmra.mrb[2].mxu0 %vm774_vm6, %v773_v25  ;;  %1613 = vmatprep.subr.mxu1 %v1914_v20 }
 0x1f9   : > { %958 = vrot.lane.b32.xlu0 %v773_v25, %s1915_s0  ;;  %1610 = vmatprep.mubr.msk.f32.mxu0 %vm1913_vm4, %v1914_v20  ;;  %v1918_v25 = vmov (!%p1522_p6), 0  }
 0x267   : > { %v961_v32 = vpop.permute.xlu0 %960 }
 0x268   : > { %1609 = vmatpush3.xpose.msk.msra.mxu0 %vm774_vm6, %v961_v32  ;;  %v1921_v32 = vmov (!%p1522_p6), 0.0  }
 0x269   : > { %1643 = vmatprep.subr.bf16.mxu0 (!%p1522_p6), %v1919_v30 }
 0x26b   : > { %v959_v33 = vpop.permute.xlu0 %958 }
 0x26c   : > { %1611 = vmatmul.mubr.msk.f32.vlgmr.msra.gmra.mrb[4].mxu0 %vm774_vm6, %v959_v33 }
 0x26d   : > { %1622 = vmatprep.mubr.msk.f32.mxu0 (!%p1522_p6), %vm1920_vm9, %v1921_v32  ;;  %1645 = vmatpush3.bf16.msra.mxu0 (!%p1522_p6), %v1644_v31 }
 0x2cb   : > { %v847_v34 = vpop.f32.mrb[2].mxu0 }
 0x2cc   : > { %v852_v35 = vsel %vm774_vm6, %v847_v34, -inf  ;;  %v1602_v36 = vpop.f32.mrb[3].mxu0 }
 0x2cd   : > { %853 = vmax.xlane.f32.xlu1 %v852_v35 }
 0x33f   : > { %v1032_v40 = vpop.f32.mrb[4].mxu0 }
 0x340   : > { %v1612_v41 = vpop.f32.mrb[5].mxu0  ;;  %v1038_v42 = vsel %vm774_vm6, %v1032_v40, -inf }
 0x341   : > { %1039 = vmax.xlane.f32.xlu1 %v1038_v42 }
 0x35a   : > { %v854_v44 = vpop.xlane.xlu1 %853 }
 0x35b   : > { %v855_v45 = vmax.f32 %v851_v43, %v854_v44 }
 0x35d   : > { %v856_v46 = vsub.f32 %v851_v43, %v855_v45  ;;  %957 = vst.msk [vmem:[#allocation3] sm:$0xff] %vm873_vm7, %v855_v45  ;;  %861 = vperm.xlu0 %1763, %v855_v45  }
 0x35f   : > { %v857_v47 = vmul.f32 1.442695, %v856_v46 }
 0x361   : > { %1062 = vrot.lane.b32.xlu0 %v769_v38, %s1915_s0  ;;  %1765 = vpow2.f32 %v857_v47 }
 0x36b   : > { %v1766_v51 = vpop.eup %1765 }
 0x36c   : > { %v868_v3 = vmul.f32 %v1766_v51, %v867_v2 }
 0x3ce   : > { %v1040_v49 = vpop.xlane.xlu1 %1039 }
 0x3cf   : > { %v1041_v50 = vmax.f32 %v1037_v48, %v1040_v49 }
 0x3d1   : > { %1152 = vst.msk [vmem:[#allocation3 + $0x8] sm:$0xff] %vm873_vm7, %v1041_v50  ;;  %1047 = vperm.xlu1 %1764, %v1041_v50   ;;  %v1042_v58 = vsub.f32 %v1037_v48, %v1041_v50 }
 0x3d3   : > { %v1043_v59 = vmul.f32 1.442695, %v1042_v58 }
 0x3d5   : > { %951 = vperm.xlu1 %1764, %v1766_v51  }
 0x3dc   : > { %v862_v52 = vpop.permute.xlu0 %861 }
 0x3dd   : > { %v864_v53 = vsub.f32 %v847_v34, %v862_v52 }
 0x3df   : > { %v865_v54 = vmul.f32 1.442695, %v864_v53 }
 0x3e0   : > { %v1063_v55 = vpop.permute.xlu0 %1062 }
 0x3e1   : > { %1767 = vpow2.f32 %v865_v54 }
 0x3e2   : > { %1769 = vpow2.f32 %v1043_v59 }
 0x3eb   : > { %v1768_v56 = vpop.eup %1767 }
 0x3ec   : > { %1606 = vmatmul.mubr.msk.f32.vlgmr.msra.gmra.mrb[2].mxu1 %vm774_vm6, %v1768_v56  ;;  %v869_v57 = vsel %vm774_vm6, %v1768_v56, 0.0  ;;  %v1770_v60 = vpop.eup %1769 }
 0x3ed   : > { %870 = vadd.xlane.f32.xlu0 %v869_v57  ;;  %1614 = vmatpush3.msra.mxu1 %v1063_v55  ;;  %v1055_v13 = vmul.f32 %v1770_v60, %v1054_v12 }
 0x3ee   : > { %1615 = vmatprep.mubr.msk.f32.mxu1 %vm1913_vm4, %v1914_v20 }
 0x403   : > { %1141 = vperm.xlu0 %1763, %v1770_v60  }
 0x407   : > { %1773 = vset.pattern.permute.xlu0 (!%p1522_p6), %v1918_v25 }
 0x450   : > { %v1048_v61 = vpop.permute.xlu1 %1047 }
 0x451   : > { %v1050_v62 = vsub.f32 %v1032_v40, %v1048_v61 }
 0x453   : > { %v1051_v63 = vmul.f32 1.442695, %v1050_v62 }
 0x454   : > { %v952_v7 = vpop.permute.xlu1 %951 }
 0x455   : > { %1771 = vpow2.f32 %v1051_v63  ;;  %v954_v8 = vmul.f32 %v952_v7, %v948_v6 }
 0x45f   : > { %v1772_v0 = vpop.eup %1771 }
 0x460   : > { %1616 = vmatmul.mubr.msk.f32.vlgmr.msra.gmra.mrb[4].mxu1 %vm774_vm6, %v1772_v0  ;;  %v1056_v1 = vsel %vm774_vm6, %v1772_v0, 0.0 }
 0x461   : > { %1057 = vadd.xlane.f32.xlu1 %v1056_v1 }
 0x47a   : > { %v871_v4 = vpop.xlane.xlu0 %870 }
 0x47b   : > { %v872_v5 = vadd.f32 %v871_v4, %v868_v3 }
 0x47d   : > { %874 = vst.msk [vmem:[#allocation4] sm:$0xff] %vm873_vm7, %v872_v5 }
 0x482   : > { %v1142_v19 = vpop.permute.xlu0 %1141 }
 0x484   : > { %v1157_v23 = vld [vmem:[#allocation4] sm:$0xff] (!%p1522_p6) }
 0x485   : > { %1774 = vrcp.f32 (!%p1522_p6), %v1157_v23 }
 0x48f   : > { %v1775_v26 = vpop.eup (!%p1522_p6), %1774 }
 0x490   : > { %1162 = vperm.xlu0 (!%p1522_p6), %1773, %v1775_v26  }
 0x4bf   : > { %v944_v9 = vpop.f32.mrb[2].mxu1 }
 0x4c0   : > { %v955_v10 = vadd.f32 %v954_v8, %v944_v9  ;;  %v1607_v11 = vpop.f32.mrb[3].mxu1 }
 0x4c2   : > { %956 = vst.msk [vmem:[#allocation5] sm:$0xff] %vm774_vm6, %v955_v10 }
 0x4c9   : > { %v1138_v18 = vld [vmem:[#allocation5] sm:$0xff] }
 0x4ca   : > { %v1144_v20 = vmul.f32 %v1142_v19, %v1138_v18 }
 0x4ee   : > { %v1058_v14 = vpop.xlane.xlu1 %1057 }
 0x4ef   : > { %v1059_v15 = vadd.f32 %v1058_v14, %v1055_v13 }
 0x4f1   : > { %1060 = vst.msk [vmem:[#allocation4 + $0x8] sm:$0xff] %vm873_vm7, %v1059_v15 }
 0x4f8   : > { %v1167_v24 = vld [vmem:[#allocation4 + $0x8] sm:$0xff] (!%p1522_p6) }
 0x4f9   : > { %1776 = vrcp.f32 (!%p1522_p6), %v1167_v24 }
 0x503   : > { %v1777_v27 = vpop.eup (!%p1522_p6), %1776 }
 0x504   : > { %1172 = vperm.xlu0 (!%p1522_p6), %1773, %v1777_v27  }
 0x50f   : > { %v1163_v34 = vpop.permute.xlu0 (!%p1522_p6), %1162 }
 0x533   : > { %v1134_v16 = vpop.f32.mrb[4].mxu1 }
 0x534   : > { %v1617_v17 = vpop.f32.mrb[5].mxu1  ;;  %1146 = vrot.lane.b32.xlu1 %v1134_v16, %s1917_s18 }
 0x583   : > { %v1173_v37 = vpop.permute.xlu0 (!%p1522_p6), %1172 }
 0x5a3   : > { %1156 = sbr.rel (%p1522_p6) target bundleno = 2025 (0x7e9), region = 68 }
 0x5a6   : > { %v1147_v21 = vpop.permute.xlu1 %1146 }
 0x5a7   : > { %v1149_v22 = vadd.f32 %v1147_v21, %v1144_v20 }
 0x5a9   : > { %1151 = vst.msk [vmem:[#allocation5] sm:$0xff] %vm1150_vm8, %v1149_v22 }
 0x5b0   : > { %v1159_v33 = vld [vmem:[#allocation5] sm:$0xff] }
 0x5b1   : > { %v1165_v35 = vmul.f32 %v1163_v34, %v1159_v33 }
 0x5b3   : > { %1166 = vst.msk [vmem:[#allocation5] sm:$0xff] %vm774_vm6, %v1165_v35 }
 0x5ba   : > { %v1169_v36 = vld [vmem:[#allocation5] sm:$0xff] }
 0x5bb   : > { %v1175_v38 = vmul.f32 %v1173_v37, %v1169_v36 }
 0x5bd   : > { %1176 = vst.msk [vmem:[#allocation5] sm:$0xff] %vm1150_vm8, %v1175_v38 }
 0x5c4   : > { %v1177_v39 = vld [vmem:[#allocation5] sm:$0xff] }
 0x5c5   : > { %1623 = vmatmul.mubr.msk.f32.vlgmr.msra.gmra.mrb[0].mxu0 %vm1180_vm10, %v1177_v39 }
 0x693   : > { %1257 = sbr.rel (%p1524_p8) target bundleno = 1690 (0x69a), region = 72 }
 0x698   : > { %v1250_v40 = vpop.f32.mrb[0].mxu0 }
 0x699   : > { %v1624_v41 = vpop.f32.mrb[1].mxu0  ;;  %1258 = vst.msk [vmem:[#allocation6] sm:$0xff] (!%p1524_p8), %vm625_vm5, %v1250_v40 }
 0x69a PF: > { %p1525_p9 = scmp.le.s32.totalorder %s1878_s17, 0 }
 0x69c   : > { %1262 = sbr.rel (%p1525_p9) target bundleno = 1700 (0x6a4), region = 76 }
 0x6a0   : > { %v1263_v42 = vld [vmem:[#allocation6] sm:$0xff] (!%p1525_p9) }
 0x6a1   : > { %v1264_v43 = vadd.f32 (!%p1525_p9), %v1263_v42, %v1250_v40 }
 0x6a3   : > { %1265 = vst.msk [vmem:[#allocation6] sm:$0xff] %vm625_vm5, %v1264_v43 }
 0x6a4 PF: > { %p1526_p10 = scmp.ne.s32.totalorder %s1878_s17, 1 }
 0x6a5   : > { %v1270_v44 = vld [vmem:[%s2091_s21] sm:$0xff] (!%p1526_p10) }
 0x6a6   : > { %1269 = sbr.rel (%p1526_p10) target bundleno = 2025 (0x7e9), region = 80  ;;  %v1527_v46 = vld [vmem:[%s2279_s7] ss:$0 sm:$0xff] (!%p1526_p10) }
 0x6a7   : > { %v1528_v59 = vld [vmem:[%s2280_s8] ss:$0 sm:$0xff] (!%p1526_p10) }
 0x6a8   : > { %v1529_v61 = vld [vmem:[%s2281_s9] ss:$0 sm:$0xff] (!%p1526_p10) }
 0x6aa   : > { %v1271_v45 = vld [vmem:[#allocation6] sm:$0xff] (!%p1526_p10) }
 0x6ab   : > { %v1279_v47 = vadd.f32 (!%p1526_p10), %v1527_v46, %v1271_v45 }
 0x6ad   : > { %v1280_v48 = vadd.f32 %v1279_v47, %v1270_v44 }
 0x6af   : > { %v1281_v49 = vsel %vm625_vm5, %v1280_v48, 0.0 }
 0x6b0   : > { %1282 = vadd.xlane.f32.xlu0 %v1281_v49 }
 0x73d   : > { %v1283_v50 = vpop.xlane.xlu0 %1282 }
 0x73e   : > { %v1285_v51 = vmul.f32 0.03125, %v1283_v50 }
 0x740   : > { %v1286_v52 = vsub.f32 %v1280_v48, %v1285_v51 }
 0x742   : > { %v1287_v53 = vmul.f32 %v1286_v52, %v1286_v52 }
 0x744   : > { %v1288_v54 = vsel %vm625_vm5, %v1287_v53, 0.0 }
 0x745   : > { %1289 = vadd.xlane.f32.xlu0 %v1288_v54 }
 0x7d2   : > { %v1290_v55 = vpop.xlane.xlu0 %1289 }
 0x7d3   : > { %v1291_v56 = vmul.f32 0.03125, %v1290_v55 }
 0x7d5   : > { %v1292_v57 = vadd.f32 1e-05, %v1291_v56 }
 0x7d7   : > { %1778 = vrsqrt.f32 %v1292_v57 }
 0x7e1   : > { %v1779_v58 = vpop.eup %1778 }
 0x7e2   : > { %v1294_v60 = vmul.f32 %v1779_v58, %v1286_v52 }
 0x7e4   : > { %v1302_v62 = vmul.f32 %v1528_v59, %v1294_v60 }
 0x7e6   : > { %v1310_v63 = vadd.f32 %v1529_v61, %v1302_v62 }
 0x7e8   : > { %1311 = vst.msk [vmem:[%s482_s26] sm:$0xff] %vm625_vm5, %v1310_v63 }
 0x7e9 PF: > { %s2323_s20 = sld [smem:[#allocation13_spill]]  ;;  %s2324_s22 = sld [smem:[#allocation11_spill]] }
 0x7ea   : > { %s1531_s15 = sshll.u32 %s1886_s19, 1  ;;  %s1328_s25 = sshll.u32 %s482_s26, 4  ;;  %s2209_s25 = int_to_ptr.vmem [resolvable:$true] %s1328_s25 }
 0x7eb   : > { %s2326_s11 = sld [smem:[#allocation28_spill]]  ;;  %s1780_s18 = scalar_lea.vmem %s2209_s25, 128 }
 0x7ec   : > { %p1781_p11 = scmp.ne.s32.totalorder %s2209_s25, %s1780_s18  ;;  %s1922_s19 = smov [#allocation7]  }
 0x7ed   : > { %s1784_s30 = sshll.u32 %s1922_s19, 4  ;;  %s1785_s30 = int_to_ptr.vmem [resolvable:$false] %s1784_s30 }
 0x7ee   : > { %p1782_p12 = pnand %p1781_p11, %p2051_p5  ;;  %s1786_s26 = scalar_lea.vmem %s1785_s30, 256 }
 0x7ef   : > { %s1324_s29 = sadd.s32 %s2323_s20, %s1531_s15  ;;  %s2327_s14 = sand.u32 1, %s2324_s22  }
 0x7f0   : > { %s1532_s10 = sshll.u32 %s1324_s29, 7  ;;  %s1313_s0 = scalar_lea.sflag [#allocation8], %s2327_s14 }
 0x7f1   : > { %s1326_s1 = scalar_lea.hbm %s2326_s11, %s1532_s10  ;;  %p1783_p13 = pneg %p1782_p12 }
 0x7f2   : > { %p1787_p0 = scmp.lt.s32.totalorder %s2209_s25, %s1785_s30  ;;  %p1788_p1 = scmp.lt.s32.totalorder %s1786_s26, %s1780_s18 }
 0x7f4   : > { %p1789_p2 = por %p1788_p1, %p1787_p0 }
 0x7f6   : > { %p1790_p3 = pnand %p1789_p2, %p1783_p13 }
 0x7f8   : > { %1793 = shalt.err (!%p1790_p3)
}
 0x7f9   : > { %s1794_s16 = scalar_lea.hbm %s1326_s1, 128  ;;  %s1798_s21 = scalar_lea.hbm %s2326_s11, 512 }
 0x7fa   : > { %p1795_p4 = scmp.ne.s32.totalorder %s1326_s1, %s1794_s16  ;;  %p1799_p9 = scmp.lt.u32.totalorder %s1326_s1, %s2326_s11 }
 0x7fb   : > { %p1800_p10 = scmp.lt.u32.totalorder %s1798_s21, %s1794_s16  ;;  %p1802_p12 = scmp.lt.u32.totalorder %s1794_s16, %s1326_s1 }
 0x7fc   : > { %p1796_p6 = pnand %p1795_p4, %p2051_p5 }
 0x7fd   : > { %p1801_p11 = por %p1800_p10, %p1799_p9 }
 0x7fe   : > { %p1797_p8 = pneg %p1796_p6 }
 0x7ff   : > { %p1803_p0 = por %p1802_p12, %p1801_p11 }
 0x801   : > { %p1804_p13 = pnand %p1803_p0, %p1797_p8 }
 0x803   : > { %1807 = shalt.err (!%p1804_p13)
}
 0x804   : > { %1646 = dma.vmem_to_hbm [thread:$0]  (%p2051_p5), %s2209_s25, 128, %s1326_s1, %s1313_s0  }
 0x805 PF: > { %s2328_s20 = sld [smem:[#allocation18_spill]]  ;;  %s2329_s22 = sld [smem:[#allocation10_spill]] }
 0x80b   : > { %p1652_p1 = scmp.ge.s32.totalorder %s2328_s20, 2  ;;  %s1340_s29 = sand.u32 1, %s2329_s22  }
 0x80c   : > { %s1341_s10 = scalar_lea.sflag [#allocation8], %s1340_s29 }
 0x80d   : > { %p1649_p2 = pnand %p1652_p1, %p2058_p7 }
 0x80f   : > { %1857 = dma.done.wait (!%p1649_p2), %s1341_s10, 128  }
 0x810   : > { %1859 = vsyncadd (!%p1649_p2), %s1341_s10, 4294967168  ;;  %s23_s24 = sadd.s32 1, %s2328_s20   ;;  %s2331_s13 = sld [smem:[#allocation11_spill]] }
 0x811   : > { %p20_p3 = scmp.ge.s32.totalorder %s23_s24, 18   ;;  %s2332_s14 = sld [smem:[#allocation12_spill]] }
 0x812   : > { %s2333_s15 = sld [smem:[#allocation25_spill]]  ;;  %s2335_s17 = sld [smem:[#allocation15_spill]] }
 0x813   : > { %s2334_s16 = sld [smem:[#allocation14_spill]]  ;;  %s2336_s18 = sld [smem:[#allocation16_spill]] }
 0x814   : > { %s2337_s19 = sld [smem:[#allocation17_spill]]  ;;  %s2338_s20 = sld [smem:[#allocation19_spill]] }
 0x815   : > { %s2339_s21 = sld [smem:[#allocation21_spill]]  ;;  %s2340_s22 = sld [smem:[#allocation23_spill]] }
 0x816   : > { %s2341_s23 = sld [smem:[#allocation24_spill]]  ;;  %22 = sbr.rel (!%p20_p3) target bundleno = 11 (0xb), region = 135 }
 0x81d   :  { %1346 = vsyncpa [#allocation8], 1 }
 0x81e   :  { %1348 = vsyncpa [#allocation8 + $0x1], 1 }

</bundles_post_ra>
